<compile_context>
chip_gen: v6e
topology: v6e:2x2x1
jax: 0.10.0
libtpu: 0.0.40
codegen_flags: <defaults>
</compile_context>

<pallas_src>
import functools
import numpy as np
import jax
import jax.numpy as jnp
from jax.experimental import pallas as pl
from jax.experimental.pallas import tpu as pltpu


def _round_up(x, m):
    return ((x + m - 1) // m) * m


# ----------------------------------------------------------------------------
# Pallas kernels
# ----------------------------------------------------------------------------

def _matmul_kernel(x_ref, w_ref, b_ref, o_ref, acc_ref, *, activation, k_steps):
    @pl.when(pl.program_id(2) == 0)
    def _():
        acc_ref[...] = jnp.zeros_like(acc_ref)

    acc_ref[...] += jnp.dot(x_ref[...], w_ref[...],
                            preferred_element_type=jnp.float32)

    @pl.when(pl.program_id(2) == k_steps - 1)
    def _():
        acc = acc_ref[...] + b_ref[...]
        if activation == "relu":
            acc = jnp.maximum(acc, 0.0)
        elif activation == "sigmoid":
            acc = jax.nn.sigmoid(acc)
        o_ref[...] = acc.astype(o_ref.dtype)


def _linear_res_ln_kernel(x_ref, w_ref, b_ref, r_ref, g_ref, bb_ref,
                          o_ref, acc_ref, *, eps, k_steps):
    """out = LayerNorm(residual + x @ w + b), K-tiled accumulation."""
    @pl.when(pl.program_id(1) == 0)
    def _():
        acc_ref[...] = jnp.zeros_like(acc_ref)

    acc_ref[...] += jnp.dot(x_ref[...], w_ref[...],
                            preferred_element_type=jnp.float32)

    @pl.when(pl.program_id(1) == k_steps - 1)
    def _():
        y = acc_ref[...] + b_ref[...] + r_ref[...]
        mu = jnp.mean(y, axis=-1, keepdims=True)
        yc = y - mu
        var = jnp.mean(yc * yc, axis=-1, keepdims=True)
        o_ref[...] = yc * jax.lax.rsqrt(var + eps) * g_ref[...] + bb_ref[...]


def _attn_kernel(q_ref, k_ref, v_ref, m_ref, o_ref, *, scale):
    q = q_ref[0]                                   # (L, Dp) bf16
    k = k_ref[0]
    v = v_ref[0]
    s = jax.lax.dot_general(q, k, (((1,), (1,)), ((), ())),
                            preferred_element_type=jnp.float32)
    s = s * scale + m_ref[0]
    s = s - jnp.max(s, axis=-1, keepdims=True)
    e = jnp.exp(s)
    p = e * pl.reciprocal(jnp.sum(e, axis=-1, keepdims=True), approx=True)
    o_ref[0] = jnp.dot(p.astype(v.dtype), v, preferred_element_type=jnp.float32)


def _heads_boxes_kernel(x_ref, wh_ref, bh_ref, w1_ref, b1_ref, w2_ref, b2_ref,
                        w3_ref, b3_ref, oh_ref, ob_ref, *, n_att, n_tot):
    x = x_ref[...]                                                    # bf16
    # fused relation heads: attention logits raw, spatial/contacting sigmoid
    y = jnp.dot(x, wh_ref[...], preferred_element_type=jnp.float32) + bh_ref[...]
    col = jax.lax.broadcasted_iota(jnp.int32, y.shape, 1)
    oh_ref[...] = jnp.where((col >= n_att) & (col < n_tot), jax.nn.sigmoid(y), y)
    # fused GetBoxes MLP: d_model -> 1024 -> 512 -> 4 (sigmoid)
    h = jnp.maximum(jnp.dot(x, w1_ref[...], preferred_element_type=jnp.float32)
                    + b1_ref[...], 0.0).astype(jnp.bfloat16)
    h = jnp.maximum(jnp.dot(h, w2_ref[...], preferred_element_type=jnp.float32)
                    + b2_ref[...], 0.0).astype(jnp.bfloat16)
    ob_ref[...] = jax.nn.sigmoid(
        jnp.dot(h, w3_ref[...], preferred_element_type=jnp.float32) + b3_ref[...])


# ----------------------------------------------------------------------------
# Weight wrappers (pre-padded, bf16-resident)
# ----------------------------------------------------------------------------

class PaddedLinear:
    """y = act(x @ w + b); weights pre-padded/bf16 at construction."""

    def __init__(self, w, b, activation="none", tn=256, tk=512):
        K, N = w.shape
        self.K, self.N = K, N
        self.tn = min(tn, _round_up(N, 128))
        self.tk = min(tk, _round_up(K, 128))
        self.Kp = _round_up(K, self.tk)
        self.Np = _round_up(N, self.tn)
        self.wp = jnp.pad(w.astype(jnp.float32),
                          ((0, self.Kp - K), (0, self.Np - N))).astype(jnp.bfloat16)
        self.bp = jnp.pad(b.astype(jnp.float32), (0, self.Np - N)).reshape(1, self.Np)
        self.activation = activation

    def __call__(self, x):
        M, K = x.shape
        assert K == self.K
        tm = 256 if M >= 256 else _round_up(M, 8)
        Mp = _round_up(M, tm)
        xp = jnp.pad(x.astype(jnp.bfloat16), ((0, Mp - M), (0, self.Kp - K)))
        k_steps = self.Kp // self.tk
        tn, tk = self.tn, self.tk
        out = pl.pallas_call(
            functools.partial(_matmul_kernel, activation=self.activation,
                              k_steps=k_steps),
            out_shape=jax.ShapeDtypeStruct((Mp, self.Np), jnp.float32),
            grid=(Mp // tm, self.Np // tn, k_steps),
            in_specs=[
                pl.BlockSpec((tm, tk), lambda i, j, k: (i, k)),
                pl.BlockSpec((tk, tn), lambda i, j, k: (k, j)),
                pl.BlockSpec((1, tn), lambda i, j, k: (0, j)),
            ],
            out_specs=pl.BlockSpec((tm, tn), lambda i, j, k: (i, j)),
            scratch_shapes=[pltpu.VMEM((tm, tn), jnp.float32)],
            compiler_params=pltpu.CompilerParams(
                dimension_semantics=("parallel", "parallel", "arbitrary")),
        )(xp, self.wp, self.bp)
        return out[:M, :self.N]


class LinearResLN:
    """y = LayerNorm(residual + x @ w + b); LN fused into the matmul epilogue."""

    def __init__(self, w, b, gamma, beta, eps=1e-5, tk=512):
        K, N = w.shape
        self.K, self.N, self.eps = K, N, eps
        self.tk = min(tk, _round_up(K, 128))
        self.Kp = _round_up(K, self.tk)
        self.wp = jnp.pad(w.astype(jnp.float32),
                          ((0, self.Kp - K), (0, 0))).astype(jnp.bfloat16)
        self.bp = b.astype(jnp.float32).reshape(1, N)
        self.g = gamma.astype(jnp.float32).reshape(1, N)
        self.bb = beta.astype(jnp.float32).reshape(1, N)

    def __call__(self, x, residual):
        M, K = x.shape
        assert K == self.K and residual.shape == (M, self.N)
        tm = 128 if M >= 128 else _round_up(M, 8)
        Mp = _round_up(M, tm)
        xp = jnp.pad(x.astype(jnp.bfloat16), ((0, Mp - M), (0, self.Kp - K)))
        rp = jnp.pad(residual.astype(jnp.float32), ((0, Mp - M), (0, 0)))
        k_steps = self.Kp // self.tk
        N, tk = self.N, self.tk
        out = pl.pallas_call(
            functools.partial(_linear_res_ln_kernel, eps=self.eps, k_steps=k_steps),
            out_shape=jax.ShapeDtypeStruct((Mp, N), jnp.float32),
            grid=(Mp // tm, k_steps),
            in_specs=[
                pl.BlockSpec((tm, tk), lambda i, k: (i, k)),
                pl.BlockSpec((tk, N), lambda i, k: (k, 0)),
                pl.BlockSpec((1, N), lambda i, k: (0, 0)),
                pl.BlockSpec((tm, N), lambda i, k: (i, 0)),
                pl.BlockSpec((1, N), lambda i, k: (0, 0)),
                pl.BlockSpec((1, N), lambda i, k: (0, 0)),
            ],
            out_specs=pl.BlockSpec((tm, N), lambda i, k: (i, 0)),
            scratch_shapes=[pltpu.VMEM((tm, N), jnp.float32)],
            compiler_params=pltpu.CompilerParams(
                dimension_semantics=("parallel", "arbitrary")),
        )(xp, self.wp, self.bp, rp, self.g, self.bb)
        return out[:M]


def pallas_attention(q, k, v, add_mask, *, nhead, scale):
    """q,k,v:(B*H, L, Dp) ; add_mask:(B, L, L) additive (mask indexed i//H in index_map)."""
    BH, L, Dp = q.shape
    B = add_mask.shape[0]
    assert BH == B * nhead
    return pl.pallas_call(
        functools.partial(_attn_kernel, scale=scale),
        out_shape=jax.ShapeDtypeStruct((BH, L, Dp), jnp.float32),
        grid=(BH,),
        in_specs=[
            pl.BlockSpec((1, L, Dp), lambda i: (i, 0, 0)),
            pl.BlockSpec((1, L, Dp), lambda i: (i, 0, 0)),
            pl.BlockSpec((1, L, Dp), lambda i: (i, 0, 0)),
            pl.BlockSpec((1, L, L), lambda i: (i // nhead, 0, 0)),
        ],
        out_specs=pl.BlockSpec((1, L, Dp), lambda i: (i, 0, 0)),
        compiler_params=pltpu.CompilerParams(dimension_semantics=("parallel",)),
    )(q.astype(jnp.bfloat16), k.astype(jnp.bfloat16), v.astype(jnp.bfloat16),
      add_mask.astype(jnp.float32))


# ----------------------------------------------------------------------------
# Conv / pooling helpers (im2col glue + Pallas matmul)
# ----------------------------------------------------------------------------

def im2col(x, kh, kw, stride, pad):
    # TODO(synk): im2col patch construction is plain-JAX glue (small masks only here).
    N, C, H, W = x.shape
    xp = jnp.pad(x, ((0, 0), (0, 0), (pad, pad), (pad, pad)))
    Ho = (H + 2 * pad - kh) // stride + 1
    Wo = (W + 2 * pad - kw) // stride + 1
    cols = []
    for i in range(kh):
        for j in range(kw):
            cols.append(xp[:, :, i:i + stride * Ho:stride, j:j + stride * Wo:stride])
    patches = jnp.stack(cols, axis=2)                      # (N, C, kh*kw, Ho, Wo)
    patches = patches.transpose(0, 3, 4, 1, 2).reshape(N * Ho * Wo, C * kh * kw)
    return patches, Ho, Wo


def conv_via_linear(x, lin, kh, kw, stride, pad):
    N = x.shape[0]
    patches, Ho, Wo = im2col(x, kh, kw, stride, pad)
    y = lin(patches)                                       # (N*Ho*Wo, O)
    return y.reshape(N, Ho, Wo, -1).transpose(0, 3, 1, 2)  # NCHW


def conv1x1_via_linear(x, lin):
    N, C, H, W = x.shape
    y = lin(x.transpose(0, 2, 3, 1).reshape(N * H * W, C))
    return y.reshape(N, H, W, -1).transpose(0, 3, 1, 2)


def maxpool2d(x, k=3, stride=2, pad=1):
    N, C, H, W = x.shape
    xp = jnp.pad(x, ((0, 0), (0, 0), (pad, pad), (pad, pad)),
                 constant_values=-jnp.inf)
    Ho = (H + 2 * pad - k) // stride + 1
    Wo = (W + 2 * pad - k) // stride + 1
    out = None
    for i in range(k):
        for j in range(k):
            s = xp[:, :, i:i + stride * Ho:stride, j:j + stride * Wo:stride]
            out = s if out is None else jnp.maximum(out, s)
    return out


def batchnorm_eval(x, gamma, beta, eps=1e-5):
    # TODO(synk): eval-mode BN with running_mean=0, running_var=1 (synthetic stats).
    scale = gamma / jnp.sqrt(1.0 + eps)
    return x * scale[None, :, None, None] + beta[None, :, None, None]


# ----------------------------------------------------------------------------
# Transformer encoder (post-norm nn.TransformerEncoderLayer, relu, batch_first)
# ----------------------------------------------------------------------------

def build_add_mask(key_pad_mask, attn_mask):
    """key_pad_mask:(B,L) bool True=pad; attn_mask:(L,L) bool True=blocked or None."""
    B, L = key_pad_mask.shape
    add = jnp.where(key_pad_mask[:, None, :], -1e9, 0.0)
    add = jnp.broadcast_to(add, (B, L, L))
    if attn_mask is not None:
        add = add + jnp.where(attn_mask[None, :, :], -1e9, 0.0)
    return add.astype(jnp.float32)


def encoder_layer(x, add_mask, p):
    B, L, E = x.shape
    H, Dh, Dp = p["nhead"], p["head_dim"], p["head_dim_pad"]
    x2 = x.reshape(B * L, E)

    qkv = p["in_proj"](x2)                                           # (B*L, 3*H*Dp)
    qkv = qkv.reshape(B, L, 3, H, Dp).transpose(2, 0, 3, 1, 4).reshape(3, B * H, L, Dp)
    oh = pallas_attention(qkv[0], qkv[1], qkv[2], add_mask,
                          nhead=H, scale=1.0 / float(np.sqrt(Dh)))
    attn = oh.reshape(B, H, L, Dp).transpose(0, 2, 1, 3).reshape(B * L, H * Dp)

    x2 = p["out_proj_ln"](attn, x2)                                  # out_proj + res + LN1
    h = p["ff1"](x2)                                                 # relu FFN up
    x2 = p["ff2_ln"](h, x2)                                          # ff2 + res + LN2
    return x2.reshape(B, L, E)


def encoder(x, add_mask, layer_params):
    for p in layer_params:
        x = encoder_layer(x, add_mask, p)
    return x


# ----------------------------------------------------------------------------
# Parameter initialization (deterministic, synthetic)
# ----------------------------------------------------------------------------

def init_linear(key, fan_in, fan_out):
    k1, k2 = jax.random.split(key)
    w = jax.random.normal(k1, (fan_in, fan_out), jnp.float32) / np.sqrt(fan_in)
    b = jax.random.normal(k2, (fan_out,), jnp.float32) * 0.01
    return w, b


def init_conv(key, out_ch, in_ch, kh, kw):
    k1, k2 = jax.random.split(key)
    fan_in = in_ch * kh * kw
    w = jax.random.normal(k1, (out_ch, in_ch, kh, kw), jnp.float32) / np.sqrt(fan_in)
    b = jax.random.normal(k2, (out_ch,), jnp.float32) * 0.01
    return w, b


def init_encoder_layer(key, d_model, dff, nhead=8):
    E, H = d_model, nhead
    Dh = E // H
    Dp = _round_up(Dh, 128)                 # 242 -> 256 (lane aligned per head)
    ks = jax.random.split(key, 4)
    w_in, b_in = init_linear(ks[0], E, 3 * E)
    w_out, b_out = init_linear(ks[1], E, E)
    f1w, f1b = init_linear(ks[2], E, dff)
    f2w, f2b = init_linear(ks[3], dff, E)

    # permute in_proj output columns so each (q/k/v, head) owns a 128-aligned Dp slot
    w_in_np, b_in_np = np.asarray(w_in), np.asarray(b_in)
    wp = np.zeros((E, 3 * H * Dp), np.float32)
    bp = np.zeros((3 * H * Dp,), np.float32)
    for t in range(3):
        for h in range(H):
            src = t * E + h * Dh
            dst = (t * H + h) * Dp
            wp[:, dst:dst + Dh] = w_in_np[:, src:src + Dh]
            bp[dst:dst + Dh] = b_in_np[src:src + Dh]

    # out_proj consumes the head-padded (H*Dp) activation: scatter rows accordingly
    w_out_np = np.asarray(w_out)
    wop = np.zeros((H * Dp, E), np.float32)
    for h in range(H):
        wop[h * Dp:h * Dp + Dh] = w_out_np[h * Dh:(h + 1) * Dh]

    ones = jnp.ones((E,), jnp.float32)
    zeros = jnp.zeros((E,), jnp.float32)
    return dict(
        nhead=H, head_dim=Dh, head_dim_pad=Dp,
        in_proj=PaddedLinear(jnp.asarray(wp), jnp.asarray(bp)),
        out_proj_ln=LinearResLN(jnp.asarray(wop), b_out, ones, zeros),
        ff1=PaddedLinear(f1w, f1b, activation="relu"),
        ff2_ln=LinearResLN(f2w, f2b, ones, zeros),
    )


def sinusoidal_pe(max_len, d_model):
    position = np.arange(max_len, dtype=np.float64)[:, None]
    div_term = np.exp(np.arange(0, d_model, 2, dtype=np.float64) *
                      (-np.log(10000.0) / d_model))
    pe = np.zeros((max_len, d_model), np.float32)
    pe[:, 0::2] = np.sin(position * div_term)
    pe[:, 1::2] = np.cos(position * div_term)
    return jnp.asarray(pe)


# ----------------------------------------------------------------------------
# Grouping / padding glue (vectorized: one gather in, one gather out)
# ----------------------------------------------------------------------------

def pad_groups(features, groups):
    B = len(groups)
    Lp = _round_up(max(len(g) for g in groups), 8)
    gather_idx = np.zeros((B, Lp), np.int32)
    valid = np.zeros((B, Lp), np.bool_)
    for i, g in enumerate(groups):
        gather_idx[i, :len(g)] = np.asarray(g, np.int32)
        valid[i, :len(g)] = True
    padded = features[jnp.asarray(gather_idx)] * jnp.asarray(valid, jnp.float32)[..., None]
    key_pad = jnp.asarray(~valid)
    flat_rows = np.nonzero(valid.reshape(-1))[0].astype(np.int32)
    return padded, key_pad, flat_rows, Lp


def unpad_groups(padded, flat_rows):
    B, Lp, D = padded.shape
    return padded.reshape(B * Lp, D)[jnp.asarray(flat_rows)]


# ----------------------------------------------------------------------------
# STTran in JAX/Pallas
# ----------------------------------------------------------------------------

class STTranPallas:
    def __init__(self, key, mode="sgdet", attention_class_num=3,
                 spatial_class_num=4, contact_class_num=5, obj_classes=None):
        assert mode in ("sgdet", "sgcls", "predcls")
        self.mode = mode
        self.obj_classes = obj_classes
        self.attention_class_num = attention_class_num
        self.spatial_class_num = spatial_class_num
        self.contact_class_num = contact_class_num
        self.d_model = 1936                 # script_required=False path

        ks = list(jax.random.split(key, 24))
        nk = iter(ks)
        D = self.d_model

        sw, sb = init_linear(next(nk), 2376, 512)
        ow, ob = init_linear(next(nk), 2376, 512)
        vw, vb = init_linear(next(nk), 256 * 7 * 7, 512)
        self.subj_fc = PaddedLinear(sw, sb)
        self.obj_fc = PaddedLinear(ow, ob)
        self.vr_fc = PaddedLinear(vw, vb)

        uw, ub = init_conv(next(nk), 256, 1024, 1, 1)
        self.union_fc = PaddedLinear(uw.reshape(256, 1024).T, ub)
        c1w, c1b = init_conv(next(nk), 128, 2, 7, 7)
        self.conv1_fc = PaddedLinear(c1w.reshape(128, 2 * 49).T, c1b, activation="relu")
        c2w, c2b = init_conv(next(nk), 256, 128, 3, 3)
        self.conv2_fc = PaddedLinear(c2w.reshape(256, 128 * 9).T, c2b, activation="relu")
        self.bn1 = (jnp.ones((128,), jnp.float32), jnp.zeros((128,), jnp.float32))
        self.bn2 = (jnp.ones((256,), jnp.float32), jnp.zeros((256,), jnp.float32))

        # synthetic "glove" vectors shared by both embeddings (clone semantics)
        # TODO(synk): obj_edge_vectors / glove weights replaced with synthetic vectors.
        embed_vecs = jax.random.normal(next(nk), (len(obj_classes), 200), jnp.float32) * 0.1
        self.obj_embed = embed_vecs
        self.obj_embed2 = embed_vecs

        self.pe = sinusoidal_pe(400, D)
        self.local_layers = [init_encoder_layer(next(nk), D, 2048)]
        self.global_layers = [init_encoder_layer(next(nk), D, 2048) for _ in range(3)]

        # fused relation heads (3+4+5 logits, padded to 128) + GetBoxes MLP weights
        aw, ab = init_linear(next(nk), D, attention_class_num)
        s2w, s2b = init_linear(next(nk), D, spatial_class_num)
        cw, cb = init_linear(next(nk), D, contact_class_num)
        n_tot = attention_class_num + spatial_class_num + contact_class_num
        wh = jnp.concatenate([aw, s2w, cw], axis=1)
        bh = jnp.concatenate([ab, s2b, cb], axis=0)
        self.n_tot = n_tot
        self.head_w = jnp.pad(wh, ((0, 0), (0, 128 - n_tot))).astype(jnp.bfloat16)
        self.head_b = jnp.pad(bh, (0, 128 - n_tot)).reshape(1, 128)

        g1w, g1b = init_linear(next(nk), D, 1024)
        g2w, g2b = init_linear(next(nk), 1024, 512)
        g3w, g3b = init_linear(next(nk), 512, 4)
        self.gb1_w = g1w.astype(jnp.bfloat16)
        self.gb1_b = g1b.reshape(1, 1024)
        self.gb2_w = g2w.astype(jnp.bfloat16)
        self.gb2_b = g2b.reshape(1, 512)
        self.gb3_w = jnp.pad(g3w, ((0, 0), (0, 124))).astype(jnp.bfloat16)
        self.gb3_b = jnp.pad(g3b, (0, 124)).reshape(1, 128)

    # ---- fused relation heads + GetBoxes (single pallas_call, reads x once) ----
    def _heads_and_boxes(self, x):
        M, E = x.shape
        tm = 128 if M >= 128 else _round_up(M, 8)
        Mp = _round_up(M, tm)
        xp = jnp.pad(x.astype(jnp.bfloat16), ((0, Mp - M), (0, 0)))
        oh, obx = pl.pallas_call(
            functools.partial(_heads_boxes_kernel,
                              n_att=self.attention_class_num, n_tot=self.n_tot),
            out_shape=(jax.ShapeDtypeStruct((Mp, 128), jnp.float32),
                       jax.ShapeDtypeStruct((Mp, 128), jnp.float32)),
            grid=(Mp // tm,),
            in_specs=[
                pl.BlockSpec((tm, E), lambda i: (i, 0)),
                pl.BlockSpec((E, 128), lambda i: (0, 0)),
                pl.BlockSpec((1, 128), lambda i: (0, 0)),
                pl.BlockSpec((E, 1024), lambda i: (0, 0)),
                pl.BlockSpec((1, 1024), lambda i: (0, 0)),
                pl.BlockSpec((1024, 512), lambda i: (0, 0)),
                pl.BlockSpec((1, 512), lambda i: (0, 0)),
                pl.BlockSpec((512, 128), lambda i: (0, 0)),
                pl.BlockSpec((1, 128), lambda i: (0, 0)),
            ],
            out_specs=(pl.BlockSpec((tm, 128), lambda i: (i, 0)),
                       pl.BlockSpec((tm, 128), lambda i: (i, 0))),
            compiler_params=pltpu.CompilerParams(dimension_semantics=("parallel",)),
        )(xp, self.head_w, self.head_b, self.gb1_w, self.gb1_b,
          self.gb2_w, self.gb2_b, self.gb3_w, self.gb3_b)
        na, ns, nc = (self.attention_class_num, self.spatial_class_num,
                      self.contact_class_num)
        heads = oh[:M]
        return (heads[:, :na], heads[:, na:na + ns],
                heads[:, na + ns:na + ns + nc], obx[:M, :4])

    def forward(self, entry):
        # entry = self.object_classifier(entry)  -- TODO(synk): pass-through (see header)
        features = entry["features"]              # (No, 2376) f32
        pair_idx = np.asarray(entry["pair_idx"])  # (Np, 2) int (host)
        pred_labels = np.asarray(entry["pred_labels"])
        boxes = entry["boxes"]                    # (No, 5) f32
        union_feat = entry["union_feat"]          # (Np, 1024, 7, 7)
        spatial_masks = entry["spatial_masks"]    # (Np, 2, 27, 27)
        Np_pairs = pair_idx.shape[0]

        subj_rep = self.subj_fc(features[pair_idx[:, 0]])
        obj_rep = self.obj_fc(features[pair_idx[:, 1]])
        entry["subj_rep_actual"] = subj_rep
        entry["obj_rep_actual"] = obj_rep

        # vr = union_func1(union_feat) + conv(spatial_masks)
        u = conv1x1_via_linear(union_feat, self.union_fc)             # 1x1: no im2col
        c = conv_via_linear(spatial_masks, self.conv1_fc, 7, 7, stride=2, pad=3)
        c = batchnorm_eval(c, *self.bn1)
        c = maxpool2d(c, k=3, stride=2, pad=1)
        c = conv_via_linear(c, self.conv2_fc, 3, 3, stride=1, pad=1)
        c = batchnorm_eval(c, *self.bn2)
        vr = u + c                                                    # (Np, 256, 7, 7)
        vr = self.vr_fc(vr.reshape(Np_pairs, 256 * 7 * 7))

        x_visual = jnp.concatenate([subj_rep, obj_rep, vr], axis=1)

        subj_class = pred_labels[pair_idx[:, 0]]
        obj_class = pred_labels[pair_idx[:, 1]]
        subj_emb = self.obj_embed[subj_class]
        obj_emb = self.obj_embed2[obj_class]
        x_semantic = jnp.concatenate([subj_emb, obj_emb], axis=1)
        rel_features = jnp.concatenate([x_visual, x_semantic], axis=1)   # (Np, 1936)

        # ---- local (spatial) transformer: group by frame of the object box ----
        im_indices = np.asarray(boxes)[pair_idx[:, 1], 0]
        frames = [np.where(im_indices == l)[0] for l in np.unique(im_indices)]
        frame_feats, key_pad1, flat1, _ = pad_groups(rel_features, frames)
        add1 = build_add_mask(key_pad1, None)
        rel_ = encoder(frame_feats, add1, self.local_layers)
        rel_features = unpad_groups(rel_, flat1)

        # ---- global (temporal) transformer: group by object class ----
        sequences = []
        for l in np.unique(obj_class):
            k = np.where(obj_class.reshape(-1) == l)[0]
            if len(k) > 0:
                sequences.append(k)
        pos_index = []
        for idx in sequences:
            _, counts = np.unique(pair_idx[idx][:, 0].reshape(-1), return_counts=True)
            p = np.concatenate([np.full(int(cnt), img_id, dtype=np.int64)
                                for img_id, cnt in enumerate(counts.tolist())])
            pos_index.append(p)

        seq_feats, key_pad2, flat2, L2p = pad_groups(rel_features, sequences)
        B2 = len(sequences)
        in_mask = jnp.asarray(~np.tril(np.ones((L2p, L2p), dtype=bool)))
        add2 = build_add_mask(key_pad2, in_mask)

        if self.mode == "sgdet":
            pos_pad = np.zeros((B2, L2p), dtype=np.int32)
            for i, p in enumerate(pos_index):
                pos_pad[i, :len(p)] = p
            seq_feats = seq_feats + self.pe[jnp.asarray(pos_pad)]
        else:
            seq_feats = seq_feats + self.pe[:L2p][None]

        out = encoder(seq_feats, add2, self.global_layers)
        rel_flat = unpad_groups(out, flat2)
        scatter_idx = np.concatenate(sequences)
        global_output = jnp.zeros_like(rel_features).at[
            jnp.asarray(scatter_idx)].set(rel_flat)

        att, spa, con, subj_boxes = self._heads_and_boxes(global_output)
        entry["attention_distribution"] = att
        entry["spatial_distribution"] = spa
        entry["contacting_distribution"] = con
        entry["subject_boxes_dsg"] = subj_boxes
        entry["global_output"] = global_output
        entry["subject_boxes_rcnn"] = boxes[pair_idx[:, 0], 1:]
        return entry


# ----------------------------------------------------------------------------
# Example run
# ----------------------------------------------------------------------------

if __name__ == "__main__":
    key = jax.random.PRNGKey(0)
    k_param, k_feat, k_union, k_mask, k_box = jax.random.split(key, 5)

    obj_classes = ["__background__", "person", "cup", "table", "chair"]
    model = STTranPallas(k_param, mode="sgdet",
                         attention_class_num=3, spatial_class_num=4,
                         contact_class_num=5, obj_classes=obj_classes)

    # 3 frames: frame0 {person,cup,table}, frame1 {person,cup,table}, frame2 {person,cup}
    num_objects = 8
    pred_labels = np.array([1, 2, 3, 1, 2, 3, 1, 2], dtype=np.int64)
    frame_of_obj = np.array([0, 0, 0, 1, 1, 1, 2, 2], dtype=np.float32)
    pair_idx = np.array([[0, 1], [0, 2], [3, 4], [3, 5], [6, 7]], dtype=np.int64)
    num_pairs = pair_idx.shape[0]

    boxes = jnp.concatenate(
        [jnp.asarray(frame_of_obj)[:, None],
         jax.random.uniform(k_box, (num_objects, 4), jnp.float32)], axis=1)

    entry = {
        "features": jax.random.normal(k_feat, (num_objects, 2376), jnp.float32) * 0.1,
        "pred_labels": pred_labels,
        "pair_idx": pair_idx,
        "boxes": boxes,
        "union_feat": jax.random.normal(k_union, (num_pairs, 1024, 7, 7), jnp.float32) * 0.1,
        "spatial_masks": (jax.random.uniform(k_mask, (num_pairs, 2, 27, 27)) > 0.5
                          ).astype(jnp.float32),
    }

    out = model.forward(entry)
    jax.block_until_ready(out["attention_distribution"])
    jax.block_until_ready(out["spatial_distribution"])
    jax.block_until_ready(out["contacting_distribution"])
    jax.block_until_ready(out["subject_boxes_dsg"])
    jax.block_until_ready(out["global_output"])

    assert out["attention_distribution"].shape == (num_pairs, 3)
    assert out["spatial_distribution"].shape == (num_pairs, 4)
    assert out["contacting_distribution"].shape == (num_pairs, 5)
    assert out["subject_boxes_dsg"].shape == (num_pairs, 4)
    assert out["global_output"].shape == (num_pairs, 1936)
    assert out["subject_boxes_rcnn"].shape == (num_pairs, 4)
    assert bool(jnp.all(jnp.isfinite(out["global_output"])))
    assert bool(jnp.all(jnp.isfinite(out["attention_distribution"])))
    assert bool(jnp.all(jnp.isfinite(out["subject_boxes_dsg"])))
    print("KERNEL_OK")
</pallas_src>

<mosaic_0001>
module attributes {stable_mosaic.version = 11 : i64} {
  func.func @_matmul_kernel(%arg0: i32, %arg1: i32, %arg2: i32, %arg3: memref<8x512xbf16, #tpu.memory_space<vmem>>, %arg4: memref<512x256xbf16, #tpu.memory_space<vmem>>, %arg5: memref<1x256xf32, #tpu.memory_space<vmem>>, %arg6: memref<8x256xf32, #tpu.memory_space<vmem>>, %arg7: memref<8x256xf32, #tpu.memory_space<vmem>>) attributes {dimension_semantics = [#tpu.dimension_semantics<parallel>, #tpu.dimension_semantics<parallel>, #tpu.dimension_semantics<arbitrary>], iteration_bounds = array<i64: 1, 2, 5>, scalar_prefetch = 0 : i64, scratch_operands = 1 : i64, tpu.core_type = #tpu.core_type<tc>, window_params = [{transform_indices = @transform_0, window_bounds = array<i64: 8, 512>}, {transform_indices = @transform_1, window_bounds = array<i64: 512, 256>}, {transform_indices = @transform_2, window_bounds = array<i64: 1, 256>}, {transform_indices = @transform_3, window_bounds = array<i64: 8, 256>}]} {
    %c0_i32 = arith.constant 0 : i32
    %0 = arith.cmpi eq, %arg2, %c0_i32 : i32
    %1 = arith.extui %0 : i1 to i32
    %c0_i32_0 = arith.constant 0 : i32
    %2 = arith.cmpi ne, %1, %c0_i32_0 : i32
    scf.if %2 {
      %cst_9 = arith.constant 0.000000e+00 : f32
      %12 = vector.broadcast %cst_9 : f32 to vector<8x256xf32>
      %c0_10 = arith.constant 0 : index
      %c0_11 = arith.constant 0 : index
      %13 = vector.load %arg7[%c0_10, %c0_11] : memref<8x256xf32, #tpu.memory_space<vmem>>, vector<8x256xf32>
      tpu.vector_store %arg7[%c0_10, %c0_11], %12 {strides = array<i32>} : memref<8x256xf32, #tpu.memory_space<vmem>>, vector<8x256xf32>,
    } else {
    }
    %c0 = arith.constant 0 : index
    %c0_1 = arith.constant 0 : index
    %3 = vector.load %arg7[%c0, %c0_1] : memref<8x256xf32, #tpu.memory_space<vmem>>, vector<8x256xf32>
    %c0_2 = arith.constant 0 : index
    %c0_3 = arith.constant 0 : index
    %4 = vector.load %arg3[%c0_2, %c0_3] : memref<8x512xbf16, #tpu.memory_space<vmem>>, vector<8x512xbf16>
    %c0_4 = arith.constant 0 : index
    %c0_5 = arith.constant 0 : index
    %5 = vector.load %arg4[%c0_4, %c0_5] : memref<512x256xbf16, #tpu.memory_space<vmem>>, vector<512x256xbf16>
    %cst = arith.constant dense<0.000000e+00> : vector<8x256xf32>
    %6 = tpu.matmul %4, %5, %cst {dimension_numbers = #tpu.dot_dimension_numbers<[1], [0], [0], [1], [0, 0, 1, 1], [], []>} : vector<8x512xbf16>, vector<512x256xbf16>, vector<8x256xf32> -> vector<8x256xf32>
    %7 = arith.addf %3, %6 : vector<8x256xf32>
    %c0_6 = arith.constant 0 : index
    %c0_7 = arith.constant 0 : index
    %8 = vector.load %arg7[%c0_6, %c0_7] : memref<8x256xf32, #tpu.memory_space<vmem>>, vector<8x256xf32>
    tpu.vector_store %arg7[%c0_6, %c0_7], %7 {strides = array<i32>} : memref<8x256xf32, #tpu.memory_space<vmem>>, vector<8x256xf32>,
    %c4_i32 = arith.constant 4 : i32
    %9 = arith.cmpi eq, %arg2, %c4_i32 : i32
    %10 = arith.extui %9 : i1 to i32
    %c0_i32_8 = arith.constant 0 : i32
    %11 = arith.cmpi ne, %10, %c0_i32_8 : i32
    scf.if %11 {
      %c0_9 = arith.constant 0 : index
      %c0_10 = arith.constant 0 : index
      %12 = vector.load %arg7[%c0_9, %c0_10] : memref<8x256xf32, #tpu.memory_space<vmem>>, vector<8x256xf32>
      %c0_11 = arith.constant 0 : index
      %c0_12 = arith.constant 0 : index
      %13 = vector.load %arg5[%c0_11, %c0_12] : memref<1x256xf32, #tpu.memory_space<vmem>>, vector<1x256xf32>
      %14 = vector.broadcast %13 : vector<1x256xf32> to vector<8x256xf32>
      %15 = arith.addf %12, %14 : vector<8x256xf32>
      %c0_13 = arith.constant 0 : index
      %c0_14 = arith.constant 0 : index
      %16 = vector.load %arg6[%c0_13, %c0_14] : memref<8x256xf32, #tpu.memory_space<vmem>>, vector<8x256xf32>
      tpu.vector_store %arg6[%c0_13, %c0_14], %15 {strides = array<i32>} : memref<8x256xf32, #tpu.memory_space<vmem>>, vector<8x256xf32>,
    } else {
    }
    return
  }
  func.func @transform_0(%arg0: i32, %arg1: i32, %arg2: i32) -> (i32, i32) {
    %c0_i32 = arith.constant 0 : i32
    return %arg0, %arg2 : i32, i32
  }
  func.func @transform_1(%arg0: i32, %arg1: i32, %arg2: i32) -> (i32, i32) {
    %c0_i32 = arith.constant 0 : i32
    return %arg2, %arg1 : i32, i32
  }
  func.func @transform_2(%arg0: i32, %arg1: i32, %arg2: i32) -> (i32, i32) {
    %c0_i32 = arith.constant 0 : i32
    %c0_i32_0 = arith.constant 0 : i32
    return %c0_i32, %arg1 : i32, i32
  }
  func.func @transform_3(%arg0: i32, %arg1: i32, %arg2: i32) -> (i32, i32) {
    %c0_i32 = arith.constant 0 : i32
    return %arg0, %arg1 : i32, i32
  }
}

</mosaic_0001>

<bundles_post_ra>
// kernel: tpu_custom_call.1
= control target key start
LH: loop header
LB: loop body
LE: loop exit
PB: predicated region body
PF: predicated region fallthrough
CT: control target
= control target key end

     0   :  { %s1967_s0 = inlined_call_operand.hbm [shape: bf16[8,2560], index: 0, kind: input, shape index: {}]   ;;  %s1968_s1 = inlined_call_operand.hbm [shape: bf16[2560,512], index: 1, kind: input, shape index: {}]   ;;  %s1969_s2 = inlined_call_operand.hbm [shape: f32[1,512], index: 2, kind: input, shape index: {}]   ;;  %s1970_s3 = inlined_call_operand.hbm [shape: f32[8,512], index: 3, kind: output, shape index: {}]  }
   0x1   :  { %1976 = sst [smem:[#allocation20_spill]] %s1967_s0 }
   0x2   :  { %1977 = sst [smem:[#allocation21_spill]] %s1968_s1 }
   0x3   :  { %1978 = sst [smem:[#allocation22_spill]] %s1969_s2 }
   0x4   :  { %1979 = sst [smem:[#allocation23_spill]] %s1970_s3 }
   0x5   :  { %8 = vsyncpa [#allocation4], 0 }
   0x6   :  { %10 = vsyncpa [#allocation4 + $0x1], 0 }
   0x7   :  { %11 = vsyncpa [#allocation7], 0 }
   0x8   :  { %13 = vsyncpa [#allocation7 + $0x1], 0 }
   0x9   :  { %14 = vsyncpa [#allocation5], 0 }
   0xa   :  { %16 = vsyncpa [#allocation5 + $0x1], 0  ;;  %s1571_s12 = smov 0   ;;  %s1573_s13 = smov 0  }
   0xb   :  { %s1575_s14 = smov 0   ;;  %s1577_s15 = smov 0  }
   0xc   :  { %s1579_s16 = smov 0   ;;  %s1581_s17 = smov 0  }
   0xd   :  { %s1583_s18 = smov 0   ;;  %s1585_s19 = smov 0  }
   0xe   :  { %s1587_s20 = smov 0   ;;  %s1589_s21 = smov 0  }
   0xf   :  { %s1591_s22 = smov 0   ;;  %s1593_s23 = smov 0  }
  0x10   :  { %s1595_s24 = smov 0   ;;  %s1597_s25 = smov 0  }
  0x11 LB: > { %1980 = sst [smem:[#allocation14_spill]] %s1489_s12  ;;  %s34_s26 = sadd.s32 1, %s1533_s23  ;;  %s1541_s25 = sphi %s1597_s25, %s22_s25   ;;  %s1537_s24 = sphi %s1595_s24, %s2024_s24   ;;  %s1533_s23 = sphi %s1593_s23, %s2023_s23   ;;  %s1529_s22 = sphi %s1591_s22, %s2022_s22   ;;  %s1525_s21 = sphi %s1589_s21, %s2021_s21   ;;  %s1521_s20 = sphi %s1587_s20, %s2020_s20   ;;  %s1517_s19 = sphi %s1585_s19, %s2019_s19   ;;  %s1513_s18 = sphi %s1583_s18, %s2018_s18   ;;  %s1509_s17 = sphi %s1581_s17, %s2017_s17   ;;  %s1505_s16 = sphi %s1579_s16, %s2016_s16   ;;  %s1501_s15 = sphi %s1577_s15, %s2015_s15   ;;  %s1497_s14 = sphi %s1575_s14, %s2014_s14   ;;  %s1493_s13 = sphi %s1573_s13, %s2013_s13   ;;  %s1489_s12 = sphi %s1571_s12, %s2010_s12  }
  0x12   : > { %1981 = sst [smem:[#allocation15_spill]] %s1493_s13  ;;  %s37_s27 = sadd.s32 1, %s1537_s24 }
  0x13   : > { %1982 = sst [smem:[#allocation16_spill]] %s1525_s21  ;;  %p35_p0 = scmp.ge.s32.totalorder %s34_s26, 5 }
  0x14   : > { %1983 = sst [smem:[#allocation17_spill]] %s1529_s22  ;;  %p58_p1 = scmp.eq.s32.totalorder %s1541_s25, 0 }
  0x15   : > { %s78_s28 = sadd.s32 1, %s1509_s17  ;;  %p85_p2 = scmp.ne.s32.totalorder %s1509_s17, %s1505_s16 }
  0x16   : > { %s2026_s26 = smov (%p35_p0, %s34_s26), 0  ;;  %s2028_s27 = smov (!%p35_p0, %s37_s27), %s1537_s24 }
  0x17   : > { %1984 = sst [smem:[#allocation18_spill]] %s2026_s26  ;;  %s1652_s29 = ssub.s32 %s1533_s23, %s2026_s26 }
  0x18   : > { %p1656_p3 = por %p85_p2, %p58_p1  ;;  %p39_p4 = scmp.ge.s32.totalorder %s2028_s27, 2 }
  0x19   : > { %p91_p5 = scmp.ne.s32.totalorder %s1505_s16, %s1501_s15  ;;  %p1975_p6 = scmp.lt.s32.totalorder %s1541_s25, 10 }
  0x1a   : > { %s2030_s27 = smov (%p39_p4, %s2028_s27), 0  ;;  %s1061_s4 = sshll.u32 %s1533_s23, 8 }
  0x1b   : > { %1986 = sst [smem:[#allocation19_spill]] %s2030_s27  ;;  %s190_s5 = sand.u32 1, %s1541_s25  }
  0x1c   : > { %s1669_s6 = ssub.s32 %s1537_s24, %s2030_s27  ;;  %s192_s8 = sand.u32 1, %s1509_s17  }
  0x1d   : > { %s75_s7 = sor.u32 %s1669_s6, %s1652_s29  ;;  %s973_s9 = sshll.u32 %s192_s8, 9 }
  0x1e   : > { %p76_p7 = scmp.eq.s32.totalorder %s75_s7, 0  ;;  %s975_s10 = sshll.u32 %s1537_s24, 1 }
  0x1f   : > { %s201_s26 = sadd.s32 %s1061_s4, %s975_s10  ;;  %s194_s3 = scalar_lea.vmem [#allocation6], %s973_s9 }
  0x20   : > { %s1676_s11 = scalar_select %p76_p7, %s1509_s17, %s78_s28  }
  0x21   : > { %s204_s22 = sshll.u32 %s194_s3, 4  ;;  %s977_s21 = sshll.u32 %s201_s26, 6  ;;  %s205_s22 = int_to_ptr.vmem [resolvable:$true] %s204_s22 }
  0x22   : > { %s1987_s1 = sld [smem:[#allocation21_spill]]  ;;  %p1687_p8 = pnand %p1975_p6, %p1656_p3 }
  0x23   : > { %s1691_s7 = scalar_lea.sflag [#allocation7], %s190_s5  ;;  %s1318_s28 = scalar_lea.vmem %s205_s22, 8192 }
  0x24   : > { %p1307_p9 = pneg %p1687_p8  ;;  %p1319_p10 = scmp.ne.s32.totalorder %s205_s22, %s1318_s28 }
  0x25   : > { %s1543_s3 = smov [#allocation6]  }
  0x26   : > { %p1321_p11 = pnand %p1319_p10, %p1307_p9  ;;  %s1323_s26 = sshll.u32 %s1543_s3, 4  ;;  %s1324_s26 = int_to_ptr.vmem [resolvable:$false] %s1323_s26 }
  0x27   : > { %s1325_s2 = scalar_lea.vmem %s1324_s26, 16384  ;;  %p1326_p13 = scmp.lt.s32.totalorder %s205_s22, %s1324_s26 }
  0x28   : > { %s203_s13 = scalar_lea.hbm %s1987_s1, %s977_s21  ;;  %p1322_p12 = pneg %p1321_p11 }
  0x29   : > { %p1327_p0 = scmp.lt.s32.totalorder %s1325_s2, %s1318_s28 }
  0x2b   : > { %p1328_p2 = por %p1327_p0, %p1326_p13 }
  0x2d   : > { %p1329_p3 = pnand %p1328_p2, %p1322_p12 }
  0x2f   : > { %1332 = shalt.err (!%p1329_p3)
}
  0x30   : > { %s1544_s12 = smov 256   ;;  %s1545_s21 = smov 128  }
  0x31   : > { %s1546_s30 = smov 8   ;;  %p981_p4 = scmp.ge.s32.totalorder %s1541_s25, 1 }
  0x32   : > { %1079 = dma.hbm_to_vmem [thread:$0]  (!%p1687_p8), %s203_s13, 8192, %s205_s22, %s1691_s7, %s1544_s12, %s1545_s21, %s1546_s30  }
  0x33   : > { %p231_p7 = scmp.lt.s32.totalorder %s1541_s25, 11  ;;  %s1705_s8 = sadd.s32 4294967295, %s1541_s25  }
  0x34   : > { %p48_p10 = scmp.eq.s32.totalorder %s1652_s29, 0  ;;  %s50_s9 = sadd.s32 1, %s1521_s20 }
  0x35   : > { %p1700_p9 = pnand %p981_p4, %p231_p7  ;;  %p57_p11 = scmp.ne.s32.totalorder %s1521_s20, %s1517_s19 }
  0x36   : > { %p63_p12 = scmp.ne.s32.totalorder %s1517_s19, %s1513_s18  ;;  %p64_p13 = scmp.eq.s32.totalorder %s1705_s8, 0 }
  0x37   : > { %s1714_s27 = scalar_select %p48_p10, %s1521_s20, %s50_s9  }
  0x38   : > { %p59_p8 = por %p58_p1, %p57_p11  ;;  %s169_s13 = sand.u32 1, %s1521_s20  }
  0x39   : > { %s1990_s0 = sld [smem:[#allocation20_spill]]  ;;  %p1727_p0 = por %p64_p13, %p63_p12 }
  0x3a   : > { %p1736_p2 = por %p91_p5, %p64_p13  ;;  %s970_s29 = sshll.u32 %s169_s13, 4 }
  0x3b   : > { %p1742_p3 = pnand %p1975_p6, %p59_p8  ;;  %s173_s2 = scalar_lea.vmem [#allocation3], %s970_s29 }
  0x3c   : > { %s170_s12 = scalar_lea.sflag [#allocation4], %s169_s13  ;;  %s1547_s15 = smov [#allocation3]  }
  0x3d   : > { %p1335_p4 = pneg %p1742_p3  ;;  %s1351_s30 = sshll.u32 %s1547_s15, 4  ;;  %s1352_s30 = int_to_ptr.vmem [resolvable:$false] %s1351_s30 }
  0x3e   : > { %s1353_s9 = scalar_lea.vmem %s1352_s30, 512 }
  0x3f   : > { %s181_s28 = scalar_lea.hbm %s1990_s0, %s1061_s4  ;;  %s183_s4 = sshll.u32 %s173_s2, 4  ;;  %s184_s4 = int_to_ptr.vmem [resolvable:$true] %s183_s4 }
  0x40   : > { %s1346_s21 = scalar_lea.vmem %s184_s4, 256  ;;  %p1354_p11 = scmp.lt.s32.totalorder %s184_s4, %s1352_s30 }
  0x41   : > { %p1347_p7 = scmp.ne.s32.totalorder %s184_s4, %s1346_s21  ;;  %p1355_p12 = scmp.lt.s32.totalorder %s1353_s9, %s1346_s21 }
  0x43   : > { %p1349_p10 = pnand %p1347_p7, %p1335_p4  ;;  %p1356_p8 = por %p1355_p12, %p1354_p11 }
  0x45   : > { %p1350_p5 = pneg %p1349_p10 }
  0x47   : > { %p1357_p6 = pnand %p1356_p8, %p1350_p5 }
  0x49   : > { %1360 = shalt.err (!%p1357_p6)
}
  0x4a   : > { %s1994_s13 = sld [smem:[#allocation15_spill]]  ;;  %s967_s10 = sadd.s32 4294967294, %s1541_s25  }
  0x4b   : > { %s1995_s22 = sld [smem:[#allocation14_spill]]  ;;  %p102_p4 = scmp.eq.s32.totalorder %s1669_s6, 0 }
  0x4c   : > { %1076 = dma.hbm_to_vmem [thread:$0]  (!%p1742_p3), %s181_s28, 256, %s184_s4, %s170_s12  }
  0x4d   : > { %s104_s29 = sadd.s32 1, %s1497_s14  ;;  %p143_p11 = scmp.eq.s32.totalorder %s1705_s8, 9 }
  0x4e   : > { %s1758_s26 = scalar_select %p102_p4, %s1497_s14, %s104_s29  }
  0x4f   : > { %p149_p12 = scmp.eq.s32.totalorder %s967_s10, 9  ;;  %s216_s21 = sand.u32 1, %s1497_s14  }
  0x50   : > { %p111_p6 = scmp.ne.s32.totalorder %s1497_s14, %s1994_s13  ;;  %s1063_s15 = sshll.u32 %s1537_s24, 5 }
  0x51   : > { %p117_p7 = scmp.ne.s32.totalorder %s1994_s13, %s1995_s22  ;;  %s978_s4 = sshll.u32 %s216_s21, 1 }
  0x52   : > { %p113_p10 = por %p111_p6, %p58_p1  ;;  %p1771_p3 = por %p143_p11, %p111_p6 }
  0x53   : > { %p1764_p5 = por %p117_p7, %p64_p13  ;;  %p1775_p8 = por %p149_p12, %p117_p7 }
  0x54   : > { %s1999_s9 = sld [smem:[#allocation22_spill]]  ;;  %p2000_p1 = scmp.lt.s32.totalorder %s1541_s25, 10 }
  0x55   : > { %s1998_s6 = scalar_select %p1775_p8, 1, 0 }
  0x56   : > { %p1784_p13 = pnand %p2000_p1, %p113_p10  ;;  %s218_s10 = scalar_lea.vmem [#allocation8], %s978_s4 }
  0x57   : > { %s226_s29 = sshll.u32 %s218_s10, 4  ;;  %s1548_s21 = smov [#allocation8]   ;;  %s227_s29 = int_to_ptr.vmem [resolvable:$true] %s226_s29 }
  0x58   : > { %p1363_p4 = pneg %p1784_p13  ;;  %s1374_s0 = scalar_lea.vmem %s227_s29, 32 }
  0x59   : > { %p1375_p6 = scmp.ne.s32.totalorder %s227_s29, %s1374_s0  ;;  %s1379_s1 = sshll.u32 %s1548_s21, 4  ;;  %s1380_s1 = int_to_ptr.vmem [resolvable:$false] %s1379_s1 }
  0x5a   : > { %s224_s13 = scalar_lea.hbm %s1999_s9, %s1063_s15  ;;  %s1381_s12 = scalar_lea.vmem %s1380_s1, 64 }
  0x5b   : > { %p1377_p7 = pnand %p1375_p6, %p1363_p4  ;;  %p1382_p12 = scmp.lt.s32.totalorder %s227_s29, %s1380_s1 }
  0x5c   : > { %p1383_p8 = scmp.lt.s32.totalorder %s1381_s12, %s1374_s0 }
  0x5d   : > { %p1378_p11 = pneg %p1377_p7 }
  0x5e   : > { %p1384_p10 = por %p1383_p8, %p1382_p12 }
  0x60   : > { %p1385_p1 = pnand %p1384_p10, %p1378_p11 }
  0x62   : > { %1388 = shalt.err (!%p1385_p1)
}
  0x63   : > { %1082 = dma.hbm_to_vmem [thread:$0]  (!%p1784_p13), %s224_s13, 32, %s227_s29, %s1691_s7  }
  0x64   : > { %235 = sbr.rel (%p1700_p9) target bundleno = 436 (0x1b4), region = 32  ;;  %s237_s15 = sand.u32 (!%p1700_p9), 1, %s1517_s19  }
  0x65   : > { %s1796_s4 = sshll.u32 (!%p1700_p9), %s237_s15, 4  ;;  %s238_s30 = scalar_lea.sflag (!%p1700_p9), [#allocation4], %s237_s15 }
  0x66   : > { %s241_s9 = scalar_lea.vmem (!%p1700_p9), [#allocation3], %s1796_s4 }
  0x69   : > { %1472 = dma.done.wait (%p1727_p0), %s238_s30, 256  }
  0x6a   : > { %1474 = vsyncadd (%p1727_p0), %s238_s30, 4294967040  ;;  %s246_s0 = sand.u32 1, %s1705_s8   ;;  %s248_s1 = sand.u32 1, %s1505_s16  }
  0x6b   : > { %s983_s7 = sshll.u32 %s248_s1, 9  ;;  %s247_s5 = scalar_lea.sflag [#allocation7], %s246_s0 }
  0x6c   : > { %s1805_s13 = scalar_lea.vmem [#allocation6], %s983_s7 }
  0x6d   : > { %1476 = dma.done.wait (%p1736_p2), %s247_s5, 8192  }
  0x6e   : > { %1478 = vsyncadd (%p1736_p2), %s247_s5, 4294959104  ;;  %s2002_s22 = sld [smem:[#allocation15_spill]] }
  0x74   : > { %s1812_s10 = sand.u32 1, %s2002_s22  }
  0x75   : > { %s984_s3 = sshll.u32 %s1812_s10, 1 }
  0x76   : > { %s1815_s29 = scalar_lea.vmem [#allocation8], %s984_s3 }
  0x77   : > { %1480 = dma.done.wait (%p1764_p5), %s247_s5, 32  }
  0x78   : > { %1482 = vsyncadd (%p1764_p5), %s247_s5, 4294967264  ;;  %s985_s8 = sshll.u32 %s1812_s10, 4  ;;  %s2003_s12 = sld [smem:[#allocation16_spill]] }
  0x79   : > { %s1822_s21 = scalar_lea.vmem [#allocation9], %s985_s8 }
  0x7e   : > { %p986_p9 = scmp.ne.s32.totalorder %s2003_s12, 0 }
  0x80   : > { %300 = sbr.rel (%p986_p9) target bundleno = 135 (0x87), region = 48 }
  0x85   : > { %v1549_v0 = vmov 0.0  }
  0x86   : > { %301 = vst [vmem:[#allocation2] sm:$0xff] %v1549_v0  ;;  %302 = vst [vmem:[#allocation2 + $0x8] sm:$0xff] %v1549_v0 }
  0x87 PF: > { %v1205_v1 = vld [vmem:[%s1805_s13 + $0x74] ss:$8 sps:$4 sm:$0xff]   ;;  %v1209_v3 = vld [vmem:[%s1805_s13 + $0x70] ss:$8 sps:$4 sm:$0xff]   ;;  %v1211_v5 = vld [vmem:[%s1805_s13 + $0x64] ss:$8 sps:$4 sm:$0xff]  }
  0x88   : > { %v1207_v2 = vld [vmem:[%s1805_s13 + $0x174] ss:$8 sps:$4 sm:$0xff]   ;;  %705 = vmatprep.subr.bf16.mxu0 %v1205_v1  ;;  %v1210_v4 = vld [vmem:[%s1805_s13 + $0x170] ss:$8 sps:$4 sm:$0xff]   ;;  %v1213_v6 = vld [vmem:[%s1805_s13 + $0x164] ss:$8 sps:$4 sm:$0xff]  }
  0x89   : > { %746 = vmatprep.subr.bf16.mxu1 %v1207_v2  ;;  %706 = vmatpush1.bf16.msra.mxu0 %v1209_v3  ;;  %v1215_v7 = vld [vmem:[%s1805_s13 + $0x60] ss:$8 sps:$4 sm:$0xff]   ;;  %v1217_v9 = vld [vmem:[%s1805_s13 + $0x54] ss:$8 sps:$4 sm:$0xff]   ;;  %v1221_v11 = vld [vmem:[%s1805_s13 + $0x50] ss:$8 sps:$4 sm:$0xff]  }
  0x8a   : > { %747 = vmatpush1.bf16.msra.mxu1 %v1210_v4  ;;  %707 = vmatprep.subr.bf16.mxu0 %v1211_v5  ;;  %v1216_v8 = vld [vmem:[%s1805_s13 + $0x160] ss:$8 sps:$4 sm:$0xff]   ;;  %v1219_v10 = vld [vmem:[%s1805_s13 + $0x154] ss:$8 sps:$4 sm:$0xff]   ;;  %v1222_v12 = vld [vmem:[%s1805_s13 + $0x150] ss:$8 sps:$4 sm:$0xff]  }
  0x8b   : > { %748 = vmatprep.subr.bf16.mxu1 %v1213_v6  ;;  %v1223_v13 = vld [vmem:[%s1805_s13 + $0x44] ss:$8 sps:$4 sm:$0xff]   ;;  %v1227_v15 = vld [vmem:[%s1805_s13 + $0x40] ss:$8 sps:$4 sm:$0xff]   ;;  %v1229_v17 = vld [vmem:[%s1805_s13 + $0x34] ss:$8 sps:$4 sm:$0xff]  }
  0x8c   : > { %v1225_v14 = vld [vmem:[%s1805_s13 + $0x144] ss:$8 sps:$4 sm:$0xff]   ;;  %v1228_v16 = vld [vmem:[%s1805_s13 + $0x140] ss:$8 sps:$4 sm:$0xff]   ;;  %v1231_v18 = vld [vmem:[%s1805_s13 + $0x134] ss:$8 sps:$4 sm:$0xff]  }
  0x8d   : > { %708 = vmatpush1.bf16.msra.mxu0 %v1215_v7  ;;  %v1233_v19 = vld [vmem:[%s1805_s13 + $0x30] ss:$8 sps:$4 sm:$0xff]   ;;  %v1235_v21 = vld [vmem:[%s1805_s13 + $0x24] ss:$8 sps:$4 sm:$0xff]   ;;  %v1239_v23 = vld [vmem:[%s1805_s13 + $0x20] ss:$8 sps:$4 sm:$0xff]  }
  0x8e   : > { %749 = vmatpush1.bf16.msra.mxu1 %v1216_v8  ;;  %709 = vmatprep.subr.bf16.mxu0 %v1217_v9  ;;  %v1234_v20 = vld [vmem:[%s1805_s13 + $0x130] ss:$8 sps:$4 sm:$0xff]   ;;  %v1237_v22 = vld [vmem:[%s1805_s13 + $0x124] ss:$8 sps:$4 sm:$0xff]   ;;  %v1240_v24 = vld [vmem:[%s1805_s13 + $0x120] ss:$8 sps:$4 sm:$0xff]  }
  0x8f   : > { %750 = vmatprep.subr.bf16.mxu1 %v1219_v10  ;;  %v1241_v25 = vld [vmem:[%s1805_s13 + $0x14] ss:$8 sps:$4 sm:$0xff]   ;;  %v1245_v27 = vld [vmem:[%s1805_s13 + $0x10] ss:$8 sps:$4 sm:$0xff]   ;;  %v1247_v29 = vld [vmem:[%s1805_s13 + $0x4] ss:$8 sps:$4 sm:$0xff]  }
  0x90   : > { %v1243_v26 = vld [vmem:[%s1805_s13 + $0x114] ss:$8 sps:$4 sm:$0xff]   ;;  %v1246_v28 = vld [vmem:[%s1805_s13 + $0x110] ss:$8 sps:$4 sm:$0xff]   ;;  %v1249_v30 = vld [vmem:[%s1805_s13 + $0x104] ss:$8 sps:$4 sm:$0xff]  }
  0x91   : > { %710 = vmatpush1.bf16.msra.mxu0 %v1221_v11  ;;  %v1251_v31 = vld [vmem:[%s1805_s13] ss:$8 sps:$4 sm:$0xff]   ;;  %v1253_v33 = vld [vmem:[%s1805_s13 + $0xf4] ss:$8 sps:$4 sm:$0xff]   ;;  %v1257_v35 = vld [vmem:[%s1805_s13 + $0xf0] ss:$8 sps:$4 sm:$0xff]  }
  0x92   : > { %751 = vmatpush1.bf16.msra.mxu1 %v1222_v12  ;;  %711 = vmatprep.subr.bf16.mxu0 %v1223_v13  ;;  %v1252_v32 = vld [vmem:[%s1805_s13 + $0x100] ss:$8 sps:$4 sm:$0xff]   ;;  %v1255_v34 = vld [vmem:[%s1805_s13 + $0x1f4] ss:$8 sps:$4 sm:$0xff]   ;;  %v1258_v36 = vld [vmem:[%s1805_s13 + $0x1f0] ss:$8 sps:$4 sm:$0xff]  }
  0x93   : > { %752 = vmatprep.subr.bf16.mxu1 %v1225_v14  ;;  %v1259_v37 = vld [vmem:[%s1805_s13 + $0xe4] ss:$8 sps:$4 sm:$0xff]   ;;  %v1263_v39 = vld [vmem:[%s1805_s13 + $0xe0] ss:$8 sps:$4 sm:$0xff]   ;;  %v1265_v41 = vld [vmem:[%s1805_s13 + $0xd4] ss:$8 sps:$4 sm:$0xff]  }
  0x94   : > { %v1261_v38 = vld [vmem:[%s1805_s13 + $0x1e4] ss:$8 sps:$4 sm:$0xff]   ;;  %v1264_v40 = vld [vmem:[%s1805_s13 + $0x1e0] ss:$8 sps:$4 sm:$0xff]   ;;  %v1267_v42 = vld [vmem:[%s1805_s13 + $0x1d4] ss:$8 sps:$4 sm:$0xff]  }
  0x95   : > { %712 = vmatpush1.bf16.msra.mxu0 %v1227_v15  ;;  %v1269_v43 = vld [vmem:[%s1805_s13 + $0xd0] ss:$8 sps:$4 sm:$0xff]   ;;  %v1271_v45 = vld [vmem:[%s1805_s13 + $0xc4] ss:$8 sps:$4 sm:$0xff]   ;;  %v1275_v50 = vld [vmem:[%s1805_s13 + $0xc0] ss:$8 sps:$4 sm:$0xff]  }
  0x96   : > { %753 = vmatpush1.bf16.msra.mxu1 %v1228_v16  ;;  %713 = vmatprep.subr.bf16.mxu0 %v1229_v17  ;;  %v1270_v44 = vld [vmem:[%s1805_s13 + $0x1d0] ss:$8 sps:$4 sm:$0xff]   ;;  %v1273_v46 = vld [vmem:[%s1805_s13 + $0x1c4] ss:$8 sps:$4 sm:$0xff]   ;;  %v1276_v51 = vld [vmem:[%s1805_s13 + $0x1c0] ss:$8 sps:$4 sm:$0xff]  }
  0x97   : > { %754 = vmatprep.subr.bf16.mxu1 %v1231_v18  ;;  %v305_v47 = vld [vmem:[%s241_s9] sm:$0xff]  ;;  %v306_v49 = vld [vmem:[%s241_s9 + $0x8] sm:$0xff]  ;;  %s2004_s18 = sld [smem:[#allocation16_spill]] }
  0x98   : > { %v988_v48 = vcombine.high %v305_v47, %v305_v47  ;;  %v990_v52 = vcombine.high %v306_v49, %v306_v49  ;;  %v1277_v53 = vld [vmem:[%s1805_s13 + $0xb4] ss:$8 sps:$4 sm:$0xff]   ;;  %v1281_v55 = vld [vmem:[%s1805_s13 + $0xb0] ss:$8 sps:$4 sm:$0xff]   ;;  %v1283_v57 = vld [vmem:[%s1805_s13 + $0xa4] ss:$8 sps:$4 sm:$0xff]   ;;  %v987_v5 = vcombine.low %v305_v47, %v305_v47  ;;  %v989_v6 = vcombine.low %v306_v49, %v306_v49 }
  0x99   : > { %714 = vmatpush1.bf16.msra.mxu0 %v1233_v19  ;;  %v1279_v54 = vld [vmem:[%s1805_s13 + $0x1b4] ss:$8 sps:$4 sm:$0xff]   ;;  %v1282_v56 = vld [vmem:[%s1805_s13 + $0x1b0] ss:$8 sps:$4 sm:$0xff]   ;;  %v1285_v58 = vld [vmem:[%s1805_s13 + $0x1a4] ss:$8 sps:$4 sm:$0xff]  }
  0x9a   : > { %755 = vmatpush1.bf16.msra.mxu1 %v1234_v20  ;;  %715 = vmatprep.subr.bf16.mxu0 %v1235_v21  ;;  %v1287_v59 = vld [vmem:[%s1805_s13 + $0xa0] ss:$8 sps:$4 sm:$0xff]   ;;  %v1289_v61 = vld [vmem:[%s1805_s13 + $0x94] ss:$8 sps:$4 sm:$0xff]   ;;  %v1293_v63 = vld [vmem:[%s1805_s13 + $0x90] ss:$8 sps:$4 sm:$0xff]  }
  0x9b   : > { %756 = vmatprep.subr.bf16.mxu1 %v1237_v22  ;;  %737 = vmatprep.mubr.bf16.mxu0 %v988_v48  ;;  %v1288_v60 = vld [vmem:[%s1805_s13 + $0x1a0] ss:$8 sps:$4 sm:$0xff]   ;;  %v1291_v62 = vld [vmem:[%s1805_s13 + $0x194] ss:$8 sps:$4 sm:$0xff]   ;;  %v1294_v0 = vld [vmem:[%s1805_s13 + $0x190] ss:$8 sps:$4 sm:$0xff]  }
  0x9c   : > { %778 = vmatprep.mubr.bf16.mxu1 %v990_v52  ;;  %v1295_v1 = vld [vmem:[%s1805_s13 + $0x84] ss:$8 sps:$4 sm:$0xff]   ;;  %v1299_v3 = vld [vmem:[%s1805_s13 + $0x80] ss:$8 sps:$4 sm:$0xff]   ;;  %v303_v8 = vld [vmem:[#allocation2] sm:$0xff] }
  0x9d   : > { %716 = vmatpush1.bf16.msra.mxu0 %v1239_v23  ;;  %v1297_v2 = vld [vmem:[%s1805_s13 + $0x184] ss:$8 sps:$4 sm:$0xff]   ;;  %v1300_v4 = vld [vmem:[%s1805_s13 + $0x180] ss:$8 sps:$4 sm:$0xff]   ;;  %v304_v12 = vld [vmem:[#allocation2 + $0x8] sm:$0xff]  ;;  %p1055_p0 = scmp.ne.s32.totalorder %s2004_s18, 4 }
  0x9e   : > { %757 = vmatpush1.bf16.msra.mxu1 %v1240_v24  ;;  %717 = vmatprep.subr.bf16.mxu0 %v1241_v25 }
  0x9f   : > { %758 = vmatprep.subr.bf16.mxu1 %v1243_v26 }
  0xa1   : > { %718 = vmatpush1.bf16.msra.mxu0 %v1245_v27 }
  0xa2   : > { %759 = vmatpush1.bf16.msra.mxu1 %v1246_v28  ;;  %719 = vmatprep.subr.bf16.mxu0 %v1247_v29 }
  0xa3   : > { %760 = vmatprep.subr.bf16.mxu1 %v1249_v30 }
  0xa5   : > { %720 = vmatpush1.bf16.msra.mxu0 %v1251_v31 }
  0xa6   : > { %761 = vmatpush1.bf16.msra.mxu1 %v1252_v32  ;;  %721 = vmatprep.subr.bf16.mxu0 %v1253_v33 }
  0xa7   : > { %762 = vmatprep.subr.bf16.mxu1 %v1255_v34 }
  0xa9   : > { %722 = vmatpush2.bf16.msra.mxu0 %v1257_v35 }
  0xaa   : > { %763 = vmatpush2.bf16.msra.mxu1 %v1258_v36  ;;  %723 = vmatprep.subr.bf16.mxu0 %v1259_v37 }
  0xab   : > { %764 = vmatprep.subr.bf16.mxu1 %v1261_v38 }
  0xad   : > { %724 = vmatpush2.bf16.msra.mxu0 %v1263_v39 }
  0xae   : > { %765 = vmatpush2.bf16.msra.mxu1 %v1264_v40  ;;  %725 = vmatprep.subr.bf16.mxu0 %v1265_v41 }
  0xaf   : > { %766 = vmatprep.subr.bf16.mxu1 %v1267_v42 }
  0xb1   : > { %726 = vmatpush2.bf16.msra.mxu0 %v1269_v43 }
  0xb2   : > { %767 = vmatpush2.bf16.msra.mxu1 %v1270_v44  ;;  %727 = vmatprep.subr.bf16.mxu0 %v1271_v45 }
  0xb3   : > { %768 = vmatprep.subr.bf16.mxu1 %v1273_v46 }
  0xb5   : > { %728 = vmatpush2.bf16.msra.mxu0 %v1275_v50 }
  0xb6   : > { %769 = vmatpush2.bf16.msra.mxu1 %v1276_v51  ;;  %729 = vmatprep.subr.bf16.mxu0 %v1277_v53 }
  0xb7   : > { %770 = vmatprep.subr.bf16.mxu1 %v1279_v54 }
  0xb9   : > { %730 = vmatpush2.bf16.msra.mxu0 %v1281_v55 }
  0xba   : > { %771 = vmatpush2.bf16.msra.mxu1 %v1282_v56  ;;  %731 = vmatprep.subr.bf16.mxu0 %v1283_v57 }
  0xbb   : > { %772 = vmatprep.subr.bf16.mxu1 %v1285_v58 }
  0xbd   : > { %732 = vmatpush2.bf16.msra.mxu0 %v1287_v59 }
  0xbe   : > { %773 = vmatpush2.bf16.msra.mxu1 %v1288_v60  ;;  %733 = vmatprep.subr.bf16.mxu0 %v1289_v61 }
  0xbf   : > { %774 = vmatprep.subr.bf16.mxu1 %v1291_v62 }
  0xc1   : > { %734 = vmatpush2.bf16.msra.mxu0 %v1293_v63 }
  0xc2   : > { %775 = vmatpush2.bf16.msra.mxu1 %v1294_v0  ;;  %735 = vmatprep.subr.bf16.mxu0 %v1295_v1 }
  0xc3   : > { %776 = vmatprep.subr.bf16.mxu1 %v1297_v2 }
  0xc5   : > { %736 = vmatpush2.bf16.msra.mxu0 %v1299_v3 }
  0xc6   : > { %777 = vmatpush2.bf16.msra.mxu1 %v1300_v4 }
  0xc8   : > { %738 = vmatmul.mubr.bf16.vlgmr.msra.gmra.mxu0 %v987_v5 }
  0xc9   : > { %779 = vmatmul.mubr.bf16.vlgmr.msra.gmra.mxu1 %v989_v6 }
 0x188   : > { %v739_v7 = vpop.f32.mrf.mxu0 }
 0x189   : > { %v780_v9 = vpop.f32.mrf.mxu1 }
 0x18a   : > { %v781_v10 = vadd.f32 %v780_v9, %v739_v7  ;;  %v741_v11 = vpop.f32.mrf.mxu0 }
 0x18b   : > { %v782_v13 = vpop.f32.mrf.mxu1 }
 0x18c   : > { %v787_v14 = vadd.f32 %v781_v10, %v303_v8  ;;  %v783_v15 = vadd.f32 %v782_v13, %v741_v11  ;;  %v743_v16 = vpop.f32.mrf.mxu0  ;;  %794 = sbr.rel (%p1055_p0) target bundleno = 412 (0x19c), region = 52 }
 0x18d   : > { %v784_v17 = vpop.f32.mrf.mxu1 }
 0x18e   : > { %789 = vst [vmem:[#allocation2] sm:$0xff] %v787_v14  ;;  %v788_v18 = vadd.f32 %v783_v15, %v304_v12  ;;  %v744_v19 = vpop.f32.mrf.mxu0 }
 0x18f   : > { %v785_v20 = vpop.f32.mrf.mxu1 }
 0x190   : > { %790 = vst [vmem:[#allocation2 + $0x8] sm:$0xff] %v788_v18 }
 0x191   : > { %v799_v21 = vlaneseq  ;;  %v797_v23 = vld [vmem:[%s1815_s29] sm:$0x3] }
 0x193   : > { %v800_v22 = vshrl.u32 %v799_v21, 7 }
 0x195   : > { %v801_v24 = vsub.s32 0, %v800_v22  ;;  %v805_v25 = vsub.s32 1, %v800_v22  ;;  %v795_v26 = vld [vmem:[#allocation2] sm:$0xff] }
 0x197   : > { %v796_v27 = vld [vmem:[#allocation2 + $0x8] sm:$0xff]  ;;  %v802_v28 = vrot.slane %v797_v23, %v801_v24  ;;  %v806_v29 = vrot.slane %v797_v23, %v805_v25 }
 0x199   : > { %v809_v30 = vadd.f32 %v802_v28, %v795_v26  ;;  %v810_v31 = vadd.f32 %v806_v29, %v796_v27 }
 0x19b   : > { %811 = vst [vmem:[%s1822_s21] sm:$0xff] %v809_v30  ;;  %812 = vst [vmem:[%s1822_s21 + $0x8] sm:$0xff] %v810_v31 }
 0x19c PF: > { %s2005_s2 = sld [smem:[#allocation17_spill]]  ;;  %s830_s1 = sshll.u32 %s1822_s21, 4  ;;  %s831_s1 = int_to_ptr.vmem [resolvable:$true] %s830_s1 }
 0x19d   : > { %s2006_s9 = sld [smem:[#allocation23_spill]]  ;;  %s814_s7 = scalar_lea.sflag [#allocation5], %s1812_s10 }
 0x19e   : > { %s1389_s5 = scalar_lea.vmem %s831_s1, 256  ;;  %s1550_s13 = smov [#allocation9]  }
 0x19f   : > { %p1390_p2 = scmp.ne.s32.totalorder %s831_s1, %s1389_s5  ;;  %s1393_s22 = sshll.u32 %s1550_s13, 4  ;;  %s1394_s22 = int_to_ptr.vmem [resolvable:$false] %s1393_s22 }
 0x1a0   : > { %s1395_s3 = scalar_lea.vmem %s1394_s22, 512  ;;  %p1396_p13 = scmp.lt.s32.totalorder %s831_s1, %s1394_s22 }
 0x1a1   : > { %p1391_p5 = pnand %p1390_p2, %p1771_p3  ;;  %p1397_p4 = scmp.lt.s32.totalorder %s1395_s3, %s1389_s5 }
 0x1a2   : > { %s1064_s15 = sshll.u32 %s2005_s2, 8 }
 0x1a3   : > { %s828_s0 = scalar_lea.hbm %s2006_s9, %s1064_s15  ;;  %p1392_p8 = pneg %p1391_p5 }
 0x1a4   : > { %p1398_p6 = por %p1397_p4, %p1396_p13 }
 0x1a6   : > { %p1399_p7 = pnand %p1398_p6, %p1392_p8 }
 0x1a8   : > { %1402 = shalt.err (!%p1399_p7)
}
 0x1a9   : > { %s1403_s29 = scalar_lea.hbm %s828_s0, 256  ;;  %s1407_s21 = scalar_lea.hbm %s2006_s9, 512 }
 0x1aa   : > { %p1404_p11 = scmp.ne.s32.totalorder %s828_s0, %s1403_s29  ;;  %p1408_p1 = scmp.lt.s32.totalorder %s828_s0, %s2006_s9 }
 0x1ab   : > { %p1409_p9 = scmp.lt.s32.totalorder %s1407_s21, %s1403_s29 }
 0x1ac   : > { %p1405_p12 = pnand %p1404_p11, %p1771_p3 }
 0x1ad   : > { %p1410_p0 = por %p1409_p9, %p1408_p1 }
 0x1ae   : > { %p1406_p10 = pneg %p1405_p12 }
 0x1b0   : > { %p1411_p2 = pnand %p1410_p0, %p1406_p10 }
 0x1b2   : > { %1414 = shalt.err (!%p1411_p2)
}
 0x1b3   : > { %1071 = dma.vmem_to_hbm [thread:$0]  (%p1771_p3), %s831_s1, 256, %s828_s0, %s814_s7  }
 0x1b4 PF: > { %s2007_s2 = sld [smem:[#allocation14_spill]]  ;;  %p1088_p5 = scmp.ge.s32.totalorder %s1541_s25, 2 }
 0x1b5   : > { %p2008_p8 = scmp.ne.s32.totalorder %s1998_s6, 0 }
 0x1b7   : > { %p1084_p13 = pnand %p1088_p5, %p2008_p8 }
 0x1b9   : > { %p1085_p4 = pneg %p1084_p13 }
 0x1ba   : > { %s842_s15 = sand.u32 1, %s2007_s2  }
 0x1bb   : > { %s843_s4 = scalar_lea.sflag [#allocation5], %s842_s15 }
 0x1bc   : > { %1484 = dma.done.wait (%p1085_p4), %s843_s4, 256  }
 0x1bd   : > { %1486 = vsyncadd (%p1085_p4), %s843_s4, 4294967040  ;;  %s22_s25 = sadd.s32 1, %s1541_s25   ;;  %s2010_s12 = sld [smem:[#allocation15_spill]] }
 0x1be   : > { %p1920_p6 = scmp.ge.s32.totalorder %s22_s25, 12   ;;  %s2011_s28 = sld [smem:[#allocation18_spill]] }
 0x1bf   : > { %s2012_s6 = sld [smem:[#allocation19_spill]]  ;;  %s2013_s13 = smov %s1497_s14 }
 0x1c0   : > { %s2014_s14 = smov %s1758_s26  ;;  %s2015_s15 = smov %s1505_s16 }
 0x1c1   : > { %s2016_s16 = smov %s1509_s17  ;;  %s2017_s17 = smov %s1676_s11 }
 0x1c2   : > { %s2018_s18 = smov %s1517_s19  ;;  %s2019_s19 = smov %s1521_s20 }
 0x1c3   : > { %s2020_s20 = smov %s1714_s27  ;;  %s2021_s21 = smov %s1533_s23 }
 0x1c4   : > { %s2022_s22 = smov %s1537_s24  ;;  %s2023_s23 = smov %s2011_s28 }
 0x1c5   : > { %s2024_s24 = smov %s2012_s6  ;;  %21 = sbr.rel (!%p1920_p6) target bundleno = 17 (0x11), region = 109 }
 0x1ca   :  { %848 = vsyncpa [#allocation4], 1 }
 0x1cb   :  { %850 = vsyncpa [#allocation4 + $0x1], 1 }
 0x1cc   :  { %851 = vsyncpa [#allocation7], 1 }
 0x1cd   :  { %853 = vsyncpa [#allocation7 + $0x1], 1 }
 0x1ce   :  { %854 = vsyncpa [#allocation5], 1 }
 0x1cf   :  { %856 = vsyncpa [#allocation5 + $0x1], 1 }

</bundles_post_ra>
